<compile_context>
chip_gen: v7x
topology: tpu7x:2x2x1
jax: 0.10.0
libtpu: 0.0.40
codegen_flags: <defaults>
</compile_context>

<pallas_src>
import jax
import jax.numpy as jnp
from jax import lax
from jax.experimental import pallas as pl
from jax.experimental.pallas import tpu as pltpu

EPS = 1e-5
_MAX_ROW_TILE = 1024  # diminishing returns past ~1k rows per tile


def _vmem_budgets():
    """Generation-aware (tile_budget_bytes, vmem_limit_bytes, multi_core)."""
    try:
        cap = pltpu.get_tpu_info().vmem_capacity_bytes
    except Exception:  # pragma: no cover - be robust if the query is unavailable
        cap = 128 * 1024 * 1024
    if cap >= 100 * 1024 * 1024:
        # 128 MiB class (v5e / v6e): single TensorCore -> go for big tiles.
        return 56 * 1024 * 1024, 96 * 1024 * 1024, False
    # 64 MiB-per-TC class (v7x): leave headroom for Mosaic internal scratch.
    return 24 * 1024 * 1024, 44 * 1024 * 1024, True


def _choose_row_tile(R, D, itemsize, tile_budget, multi_core):
    """Largest sublane-aligned row tile that fits the VMEM budget.

    Accounting per row: 2x double-buffered input + 2x double-buffered output
    (4 * itemsize bytes/elem) plus up to ~3 f32-equivalent full-tile
    intermediates live inside the kernel (12 bytes/elem).
    """
    work_bytes = 12
    bytes_per_row = D * (4 * itemsize + work_bytes)
    tr = tile_budget // bytes_per_row
    tr = min(int(tr), _MAX_ROW_TILE)
    tr = max(8, tr - (tr % 8))            # sublane (8) aligned
    if multi_core and R >= 32:
        # v7x: target >= 4 grid steps (2 TensorCores x >= 2 pipelined steps).
        quarter = -(-R // 4)
        quarter = -(-quarter // 8) * 8
        tr = min(tr, quarter)
    tr = min(tr, R)                        # tr == R (< 8) ok: full-dim block
    return max(tr, 1)


def layernorm_kernel(x_ref, scale_ref, o_ref):
    # x_ref: (TR, D) tile of rows; scale_ref: (1, D) in float32.
    x = x_ref[...]
    scale = scale_ref[...]  # f32 parameter, never down-cast in the wrapper

    if x.dtype == jnp.float32:
        # Two-pass f32 path (matches the reference math closely).
        mean = jnp.mean(x, axis=-1, keepdims=True)
        xc = x - mean
        var = jnp.mean(xc * xc, axis=-1, keepdims=True)      # population variance
        x_norm = xc * lax.rsqrt(var + EPS)
        # Exact reproduction of the reference forward (adds scale, not shift).
        o_ref[...] = (scale * x_norm + scale).astype(o_ref.dtype)
    else:
        # Low-precision path: f32-accumulated row stats, full-tile elementwise
        # work in the native dtype (bf16 VALU on v6e/v7x) — no full-tile f32
        # materialization, lower VALU and VMEM pressure on v7x.
        mean32 = jnp.mean(x, axis=-1, dtype=jnp.float32, keepdims=True)
        msq32 = jnp.mean(x * x, axis=-1, dtype=jnp.float32, keepdims=True)
        var32 = jnp.maximum(msq32 - mean32 * mean32, 0.0)
        inv32 = lax.rsqrt(var32 + EPS)
        mean = mean32.astype(x.dtype)
        inv = inv32.astype(x.dtype)
        sc = scale.astype(x.dtype)
        o_ref[...] = (((x - mean) * inv) * sc + sc).astype(o_ref.dtype)


def layer_norm(x, scale, shift=None, *, row_tile=None):
    """x: (..., D). scale/shift: (D,). Returns same shape/dtype as x.

    `shift` is accepted for API parity with the PyTorch module but the
    reference forward never uses it (it adds `scale` twice), so it is not
    passed to the kernel — saving a VMEM buffer and a DMA per grid step.
    """
    del shift  # unused by the reference forward
    orig_shape = x.shape
    D = orig_shape[-1]
    x2 = x.reshape(-1, D)
    R = x2.shape[0]
    itemsize = jnp.dtype(x.dtype).itemsize

    tile_budget, vmem_limit, multi_core = _vmem_budgets()
    tr = row_tile if row_tile is not None else _choose_row_tile(
        R, D, itemsize, tile_budget, multi_core)
    tr = min(tr, R)
    grid = (pl.cdiv(R, tr),)

    # Keep the learned scale in f32; its (1, D) block has a constant index so
    # it is only DMA'd once regardless of grid size.
    scale2 = scale.reshape(1, D).astype(jnp.float32)

    # TODO(synk): for D < 128 (or D % 128 != 0) the output store is lane-masked;
    # a lane-dense repack (fold 128/D rows into the lane axis) would recover
    # store bandwidth for tiny embedding dims like the D=32 demo.

    cost = pl.CostEstimate(
        flops=int(8 * R * D),
        transcendentals=int(R),
        bytes_accessed=int(2 * R * D * itemsize + 4 * D),
    )

    out = pl.pallas_call(
        layernorm_kernel,
        out_shape=jax.ShapeDtypeStruct((R, D), x.dtype),
        grid_spec=pltpu.PrefetchScalarGridSpec(
            num_scalar_prefetch=0,
            grid=grid,
            in_specs=[
                pl.BlockSpec((tr, D), lambda i: (i, 0)),
                pl.BlockSpec((1, D), lambda i: (0, 0)),
            ],
            out_specs=pl.BlockSpec((tr, D), lambda i: (i, 0)),
        ),
        compiler_params=pltpu.CompilerParams(
            dimension_semantics=("parallel",),
            vmem_limit_bytes=vmem_limit,
        ),
        cost_estimate=cost,
    )(x2, scale2)

    return out.reshape(orig_shape)


if __name__ == "__main__":
    key = jax.random.PRNGKey(0)
    batch, seq, emb_dim = 2, 8, 32

    x = jax.random.normal(key, (batch, seq, emb_dim), dtype=jnp.float32)

    # Deterministic parameter init, matching the module's __init__:
    scale = jnp.ones((emb_dim,), dtype=jnp.float32)   # nn.Parameter(torch.ones)
    shift = jnp.zeros((emb_dim,), dtype=jnp.float32)  # nn.Parameter(torch.zeros)

    def ref_fn(xv, sc):
        mean = jnp.mean(xv, axis=-1, keepdims=True)
        var = jnp.mean(jnp.square(xv - mean), axis=-1, keepdims=True)
        xn = (xv - mean) / jnp.sqrt(var + EPS)
        return sc * xn + sc  # the reference forward adds scale, not shift

    out = jax.block_until_ready(layer_norm(x, scale, shift))
    assert jnp.allclose(out, ref_fn(x, scale), atol=1e-5, rtol=1e-5)

    # Non-divisible row count (R % tr != 0): confirms masked writeback.
    x_odd = jax.random.normal(jax.random.PRNGKey(1), (3, 7, emb_dim), dtype=jnp.float32)
    out_odd = jax.block_until_ready(layer_norm(x_odd, scale, shift))
    assert jnp.allclose(out_odd, ref_fn(x_odd, scale), atol=1e-5, rtol=1e-5)

    # bf16 path: native-dtype elementwise math with f32-accumulated row stats.
    x_bf = jax.random.normal(jax.random.PRNGKey(2), (4, 16, emb_dim),
                             dtype=jnp.float32).astype(jnp.bfloat16)
    out_bf = jax.block_until_ready(layer_norm(x_bf, scale, shift))
    ref_bf = ref_fn(x_bf.astype(jnp.float32), scale)
    assert jnp.allclose(out_bf.astype(jnp.float32), ref_bf, atol=6e-2, rtol=6e-2)

    print("KERNEL_OK")
</pallas_src>

<mosaic_0001>
module attributes {stable_mosaic.version = 11 : i64} {
  func.func @layernorm_kernel(%arg0: i32, %arg1: memref<16x32xf32, #tpu.memory_space<vmem>>, %arg2: memref<1x32xf32, #tpu.memory_space<vmem>>, %arg3: memref<16x32xf32, #tpu.memory_space<vmem>>) attributes {dimension_semantics = [#tpu.dimension_semantics<parallel>], iteration_bounds = array<i64: 1>, scalar_prefetch = 0 : i64, scratch_operands = 0 : i64, tpu.core_type = #tpu.core_type<tc>, window_params = [{transform_indices = @transform_0, window_bounds = array<i64: 16, 32>}, {pipeline_mode = #tpu.pipeline_mode<synchronous>, transform_indices = @transform_1, window_bounds = array<i64: 1, 32>}, {transform_indices = @transform_2, window_bounds = array<i64: 16, 32>}]} {
    %c0 = arith.constant 0 : index
    %c0_0 = arith.constant 0 : index
    %0 = vector.load %arg1[%c0, %c0_0] : memref<16x32xf32, #tpu.memory_space<vmem>>, vector<16x32xf32>
    %c0_1 = arith.constant 0 : index
    %c0_2 = arith.constant 0 : index
    %1 = vector.load %arg2[%c0_1, %c0_2] : memref<1x32xf32, #tpu.memory_space<vmem>>, vector<1x32xf32>
    %cst = arith.constant dense<0.000000e+00> : vector<16xf32>
    %2 = vector.multi_reduction <add>, %0, %cst [1] : vector<16x32xf32> to vector<16xf32>
    %3 = vector.shape_cast %2 : vector<16xf32> to vector<16x1xf32>
    %cst_3 = arith.constant 3.200000e+01 : f32
    %4 = vector.broadcast %cst_3 : f32 to vector<16x1xf32>
    %5 = arith.divf %3, %4 : vector<16x1xf32>
    %6 = vector.broadcast %5 : vector<16x1xf32> to vector<16x32xf32>
    %7 = arith.subf %0, %6 : vector<16x32xf32>
    %8 = arith.mulf %7, %7 : vector<16x32xf32>
    %cst_4 = arith.constant dense<0.000000e+00> : vector<16xf32>
    %9 = vector.multi_reduction <add>, %8, %cst_4 [1] : vector<16x32xf32> to vector<16xf32>
    %10 = vector.shape_cast %9 : vector<16xf32> to vector<16x1xf32>
    %cst_5 = arith.constant 3.200000e+01 : f32
    %11 = vector.broadcast %cst_5 : f32 to vector<16x1xf32>
    %12 = arith.divf %10, %11 : vector<16x1xf32>
    %cst_6 = arith.constant 9.99999974E-6 : f32
    %13 = vector.broadcast %cst_6 : f32 to vector<16x1xf32>
    %14 = arith.addf %12, %13 : vector<16x1xf32>
    %15 = math.rsqrt %14 : vector<16x1xf32>
    %16 = vector.broadcast %15 : vector<16x1xf32> to vector<16x32xf32>
    %17 = arith.mulf %7, %16 : vector<16x32xf32>
    %18 = vector.broadcast %1 : vector<1x32xf32> to vector<16x32xf32>
    %19 = arith.mulf %18, %17 : vector<16x32xf32>
    %20 = vector.broadcast %1 : vector<1x32xf32> to vector<16x32xf32>
    %21 = arith.addf %19, %20 : vector<16x32xf32>
    %c0_7 = arith.constant 0 : index
    %c0_8 = arith.constant 0 : index
    %22 = vector.load %arg3[%c0_7, %c0_8] : memref<16x32xf32, #tpu.memory_space<vmem>>, vector<16x32xf32>
    tpu.vector_store %arg3[%c0_7, %c0_8], %21 {strides = array<i32>} : memref<16x32xf32, #tpu.memory_space<vmem>>, vector<16x32xf32>,
    return
  }
  func.func @transform_0(%arg0: i32) -> (i32, i32) {
    %c0_i32 = arith.constant 0 : i32
    %c0_i32_0 = arith.constant 0 : i32
    return %arg0, %c0_i32 : i32, i32
  }
  func.func @transform_1(%arg0: i32) -> (i32, i32) {
    %c0_i32 = arith.constant 0 : i32
    %c0_i32_0 = arith.constant 0 : i32
    %c0_i32_1 = arith.constant 0 : i32
    return %c0_i32, %c0_i32_0 : i32, i32
  }
  func.func @transform_2(%arg0: i32) -> (i32, i32) {
    %c0_i32 = arith.constant 0 : i32
    %c0_i32_0 = arith.constant 0 : i32
    return %arg0, %c0_i32 : i32, i32
  }
}

</mosaic_0001>

<bundles_post_ra>
// kernel: tpu_custom_call.1
= control target key start
LH: loop header
LB: loop body
LE: loop exit
PB: predicated region body
PF: predicated region fallthrough
CT: control target
= control target key end

     0   :  { %7 = vsyncpa [#allocation3], 0  ;;  %s249_s0 = inlined_call_operand.hbm [shape: f32[16,32], index: 0, kind: input, shape index: {}]   ;;  %s250_s1 = inlined_call_operand.hbm [shape: f32[1,32], index: 1, kind: input, shape index: {}]   ;;  %s251_s2 = inlined_call_operand.hbm [shape: f32[16,32], index: 2, kind: output, shape index: {}]  }
   0x1   :  { %8 = vsyncpa [#allocation6], 0 }
   0x2   :  { %9 = vsyncpa [#allocation4], 0  ;;  %s181_s9 = smov [#allocation2]   ;;  %s109_s13 = scalar_lea.hbm %s249_s0, 256 }
   0x3   :  { %s15_s10 = sshll.u32 %s181_s9, 4  ;;  %p110_p0 = scmp.ne.s32.totalorder %s249_s0, %s109_s13  ;;  %s16_s10 = int_to_ptr.vmem [resolvable:$true] %s15_s10 }
   0x4   :  { %p113_p1 = scmp.lt.u32.totalorder %s109_s13, %s249_s0 }
   0x6   :  { %p115_p2 = pnand %p113_p1, %p110_p0 }
   0x8   :  { %118 = shalt.err (!%p115_p2)
}
   0x9   :  { %s119_s18 = scalar_lea.vmem %s16_s10, 256  ;;  %p124_p4 = scmp.lt.s32.totalorder %s16_s10, %s16_s10 }
   0xa   :  { %p120_p3 = scmp.ne.s32.totalorder %s16_s10, %s119_s18  ;;  %p125_p5 = scmp.lt.s32.totalorder %s119_s18, %s119_s18 }
   0xc   :  { %p126_p6 = por %p125_p5, %p124_p4 }
   0xe   :  { %p127_p7 = pnand %p126_p6, %p120_p3 }
  0x10   :  { %130 = shalt.err (!%p127_p7)
}
  0x11   :  { %s182_s19 = smov 128   ;;  %s183_s20 = smov 8  }
  0x12   :  { %21 = dma.hbm_to_vmem [thread:$0]  %s249_s0, 256, %s16_s10, [#allocation3], %s182_s19, %s182_s19, %s183_s20  }
  0x13   :  { %s184_s23 = smov [#allocation5]   ;;  %s131_s27 = scalar_lea.hbm %s250_s1, 16 }
  0x14   :  { %s28_s24 = sshll.u32 %s184_s23, 4  ;;  %p132_p8 = scmp.ne.s32.totalorder %s250_s1, %s131_s27  ;;  %s29_s24 = int_to_ptr.vmem [resolvable:$true] %s28_s24 }
  0x15   :  { %p135_p9 = scmp.lt.u32.totalorder %s131_s27, %s250_s1 }
  0x17   :  { %p137_p10 = pnand %p135_p9, %p132_p8 }
  0x19   :  { %140 = shalt.err (!%p137_p10)
}
  0x1a   :  { %s141_s4 = scalar_lea.vmem %s29_s24, 16  ;;  %s145_s0 = scalar_lea.vmem %s29_s24, 32 }
  0x1b   :  { %p142_p11 = scmp.ne.s32.totalorder %s29_s24, %s141_s4  ;;  %p146_p12 = scmp.lt.s32.totalorder %s29_s24, %s29_s24 }
  0x1c   :  { %p147_p13 = scmp.lt.s32.totalorder %s145_s0, %s141_s4 }
  0x1e   :  { %p148_p0 = por %p147_p13, %p146_p12 }
  0x20   :  { %p149_p1 = pnand %p148_p0, %p142_p11 }
  0x22   :  { %152 = shalt.err (!%p149_p1)
}
  0x23   :  { %31 = dma.hbm_to_vmem [thread:$0]  %s250_s1, 16, %s29_s24, [#allocation6]  }
  0x24   :  { %175 = dma.done.wait [#allocation3], 256  }
  0x25   :  { %176 = vsyncadd [#allocation3], 4294967040 }
  0x26   :  { %177 = dma.done.wait [#allocation6], 16  }
  0x27   :  { %178 = vsyncadd [#allocation6], 4294967280  ;;  %vm41_vm0 = vcmask 261120   ;;  %v38_v0 = vld [vmem:[#allocation2] sm:$0xff]  ;;  %v39_v1 = vld [vmem:[#allocation2 + $0x8] sm:$0xff]  ;;  %s185_s1 = smov [#allocation7]  }
  0x28   :  { %v42_v2 = vsel %vm41_vm0, %v38_v0, 0.0  ;;  %v45_v3 = vsel %vm41_vm0, %v39_v1, 0.0  ;;  %v99_v21 = vld [vmem:[#allocation5] ss:$0 sm:$0xff]  ;;  %s86_s7 = sshll.u32 %s185_s1, 4  ;;  %s87_s7 = int_to_ptr.vmem [resolvable:$true] %s86_s7 }
  0x29   :  { %43 = vadd.xlane.f32.xlu0 %v42_v2  ;;  %s153_s8 = scalar_lea.vmem %s87_s7, 256  ;;  %p158_p3 = scmp.lt.s32.totalorder %s87_s7, %s87_s7 }
  0x2a   :  { %p154_p2 = scmp.ne.s32.totalorder %s87_s7, %s153_s8  ;;  %p159_p4 = scmp.lt.s32.totalorder %s153_s8, %s153_s8 }
  0x2c   :  { %p160_p5 = por %p159_p4, %p158_p3 }
  0x2d   :  { %46 = vadd.xlane.f32.xlu0 %v45_v3 }
  0x2e   :  { %p161_p6 = pnand %p160_p5, %p154_p2 }
  0xb6   :  { %v44_v4 = vpop.xlane.xlu0 %43 }
  0xb7   :  { %v49_v5 = vmul.f32 0.03125, %v44_v4 }
  0xb9   :  { %v51_v6 = vsub.f32 %v38_v0, %v49_v5 }
  0xba   :  { %v47_v7 = vpop.xlane.xlu0 %46 }
  0xbb   :  { %v50_v8 = vmul.f32 0.03125, %v47_v7  ;;  %v53_v9 = vmul.f32 %v51_v6, %v51_v6 }
  0xbd   :  { %v52_v10 = vsub.f32 %v39_v1, %v50_v8  ;;  %v55_v11 = vsel %vm41_vm0, %v53_v9, 0.0 }
  0xbe   :  { %56 = vadd.xlane.f32.xlu1 %v55_v11 }
  0xbf   :  { %v54_v12 = vmul.f32 %v52_v10, %v52_v10 }
  0xc1   :  { %v58_v13 = vsel %vm41_vm0, %v54_v12, 0.0 }
  0xc2   :  { %59 = vadd.xlane.f32.xlu1 %v58_v13 }
 0x14b   :  { %v57_v14 = vpop.xlane.xlu1 %56 }
 0x14c   :  { %v61_v15 = vmul.f32 0.03125, %v57_v14 }
 0x14e   :  { %v63_v16 = vadd.f32 1e-05, %v61_v15 }
 0x14f   :  { %v60_v17 = vpop.xlane.xlu1 %59 }
 0x150   :  { %105 = vrsqrt.f32 %v63_v16  ;;  %v62_v18 = vmul.f32 0.03125, %v60_v17 }
 0x152   :  { %v64_v19 = vadd.f32 1e-05, %v62_v18 }
 0x154   :  { %107 = vrsqrt.f32 %v64_v19 }
 0x15a   :  { %v106_v20 = vpop.eup %105 }
 0x15b   :  { %v67_v22 = vmul.f32 %v106_v20, %v51_v6 }
 0x15d   :  { %v75_v23 = vmul.f32 %v99_v21, %v67_v22 }
 0x15e   :  { %v108_v24 = vpop.eup %107 }
 0x15f   :  { %v68_v25 = vmul.f32 %v108_v24, %v52_v10  ;;  %v77_v26 = vadd.f32 %v99_v21, %v75_v23 }
 0x161   :  { %v76_v27 = vmul.f32 %v99_v21, %v68_v25  ;;  %79 = vst.msk [vmem:[#allocation7] sm:$0xff] %vm41_vm0, %v77_v26 }
 0x163   :  { %v78_v28 = vadd.f32 %v99_v21, %v76_v27 }
 0x165   :  { %80 = vst.msk [vmem:[#allocation7 + $0x8] sm:$0xff] %vm41_vm0, %v78_v28 }
 0x166   :  { %164 = shalt.err (!%p161_p6)
}
 0x167   :  { %s165_s11 = scalar_lea.hbm %s251_s2, 256 }
 0x168   :  { %p166_p7 = scmp.ne.s32.totalorder %s251_s2, %s165_s11  ;;  %p169_p8 = scmp.lt.u32.totalorder %s165_s11, %s251_s2 }
 0x16a   :  { %p171_p9 = pnand %p169_p8, %p166_p7 }
 0x16c   :  { %174 = shalt.err (!%p171_p9)
}
 0x16d   :  { %92 = dma.vmem_to_hbm [thread:$0]  %s87_s7, 256, %s251_s2, [#allocation4], %s182_s19, %s182_s19, %s183_s20  }
 0x16e   :  { %179 = dma.done.wait [#allocation4], 256  }
 0x16f   :  { %180 = vsyncadd [#allocation4], 4294967040 }
 0x170   :  { %96 = vsyncpa [#allocation3], 1 }
 0x171   :  { %97 = vsyncpa [#allocation6], 1 }
 0x172   :  { %98 = vsyncpa [#allocation4], 1 }

</bundles_post_ra>
